<compile_context>
chip_gen: v7x
topology: tpu7x:2x2x1
jax: 0.10.0
libtpu: 0.0.40
codegen_flags: <defaults>
</compile_context>

<pallas_src>
import functools

import jax
import jax.numpy as jnp
from jax import lax
from jax.experimental import pallas as pl
from jax.experimental.pallas import tpu as pltpu


def _outconv_kernel(x_ref, w_ref, b_ref, o_ref):
    # x block: (1, 2*Cin, t)    w: (2*Cout, 2*Cin)    b: (2*Cout, 1)
    # o block: (1, 2*Cout, t) == [yr ; yi] stacked on the channel axis.
    y = jnp.dot(w_ref[...], x_ref[0], preferred_element_type=jnp.float32)
    o_ref[0] = y + b_ref[...]


def _pick_spatial_tile(N, Cin, Cout, HW, t_cap):
    """Largest 128-multiple lane tile whose double-buffered (in + out) blocks
    fit a conservative VMEM budget that is safe on v5e/v6e/v7x defaults."""
    budget = 8 * 1024 * 1024                      # bytes for 2x(in+out) blocks
    per_lane = 2 * 4 * (2 * Cin + 2 * Cout)       # double-buffered f32 B/lane
    t_fit = max(128, (budget // per_lane) // 128 * 128)
    t = min(t_cap, t_fit)
    if HW <= t:
        # v7x has 2 TensorCores: if the batch axis alone can't feed both,
        # force >= 2 spatial tiles (only when HW is large enough to split).
        if N == 1 and HW >= 256:
            return (((HW + 1) // 2) + 127) // 128 * 128
        return HW            # full-extent block: legal even if HW % 128 != 0
    return t                 # multiple of 128; ragged last tile is masked


@functools.partial(jax.jit, static_argnames=("t_hw",))
def out_conv_pallas(x, weight, bias, *, t_hw=32768):
    """1x1 complex conv (PyTorch OutConv forward).

    x:      (N, Cin, H, W) complex64   (NCHW, matches PyTorch)
    weight: (Cout, Cin)    complex64   (PyTorch weight[:, :, 0, 0])
    bias:   (Cout,)        complex64
    returns (N, Cout, H, W) complex64
    """
    N, Cin, H, W = x.shape
    Cout = weight.shape[0]
    HW = H * W

    # Stacked real representation in native NCHW order (single fused XLA pass,
    # same bytes as the old separate xr/xi split).
    # TODO(synk): Pallas refs can't be complex64, so this pass and the
    # lax.complex recombine below remain in XLA; a fully fused version would
    # bitcast x to interleaved f32 lanes and (de)interleave in-kernel with a
    # pltpu.roll pairwise lane swizzle.
    xr = jnp.real(x).reshape(N, Cin, HW)
    xi = jnp.imag(x).reshape(N, Cin, HW)
    x2 = jnp.concatenate([xr, xi], axis=1)                 # (N, 2*Cin, HW)

    # Fused complex weights/bias:  [yr ; yi] = W2 @ [xr ; xi] + [br ; bi].
    wr = jnp.real(weight).astype(jnp.float32)
    wi = jnp.imag(weight).astype(jnp.float32)
    w2 = jnp.concatenate(
        [jnp.concatenate([wr, -wi], axis=1),
         jnp.concatenate([wi, wr], axis=1)], axis=0)       # (2*Cout, 2*Cin)
    b2 = jnp.concatenate(
        [jnp.real(bias), jnp.imag(bias)]).astype(jnp.float32).reshape(2 * Cout, 1)

    t = _pick_spatial_tile(N, Cin, Cout, HW, t_hw)
    grid = (N, pl.cdiv(HW, t))

    x_spec = pl.BlockSpec((1, 2 * Cin, t), lambda n, j: (n, 0, j))
    w_spec = pl.BlockSpec((2 * Cout, 2 * Cin), lambda n, j: (0, 0))
    b_spec = pl.BlockSpec((2 * Cout, 1), lambda n, j: (0, 0))
    # Lane-dense output: spatial on the 128-lane axis, wide unmasked stores.
    # If profiling still shows exposed DMA after the tile-size fix, bump x_spec
    # to pipeline_mode=pl.Buffered(3).
    o_spec = pl.BlockSpec((1, 2 * Cout, t), lambda n, j: (n, 0, j))

    cost = pl.CostEstimate(
        flops=8 * N * HW * Cin * Cout,
        transcendentals=0,
        bytes_accessed=4 * (2 * N * Cin * HW + 2 * N * Cout * HW
                            + 4 * Cout * Cin + 2 * Cout),
    )

    out = pl.pallas_call(
        _outconv_kernel,
        out_shape=jax.ShapeDtypeStruct((N, 2 * Cout, HW), jnp.float32),
        grid_spec=pltpu.PrefetchScalarGridSpec(
            num_scalar_prefetch=0,
            grid=grid,
            in_specs=[x_spec, w_spec, b_spec],
            out_specs=o_spec,
        ),
        compiler_params=pltpu.CompilerParams(
            dimension_semantics=("parallel", "parallel"),
            # Blocks are budgeted to ~8 MiB double-buffered; 32 MiB is safely
            # below physical VMEM on every generation (incl. v7x's 64 MiB).
            vmem_limit_bytes=32 * 1024 * 1024,
        ),
        cost_estimate=cost,
    )(x2, w2, b2)

    # Recombine planar [yr ; yi] into complex64 (review option (c): keep the
    # kernel's stores lane-dense; recombine stays a single cheap XLA pass).
    yr = out[:, :Cout, :]
    yi = out[:, Cout:, :]
    return lax.complex(yr, yi).reshape(N, Cout, H, W)


if __name__ == "__main__":
    key = jax.random.PRNGKey(0)
    k_xr, k_xi, k_wr, k_wi, k_br, k_bi = jax.random.split(key, 6)

    N, Cin, Cout, H, W = 2, 4, 3, 16, 16

    x = (jax.random.normal(k_xr, (N, Cin, H, W), dtype=jnp.float32)
         + 1j * jax.random.normal(k_xi, (N, Cin, H, W), dtype=jnp.float32)
         ).astype(jnp.complex64)

    # Deterministic synthetic parameters (shapes match nn.Conv2d(Cin, Cout, 1).cfloat).
    fan_in = float(Cin)  # kernel_size = 1
    bound = 1.0 / jnp.sqrt(fan_in)
    weight = (jax.random.uniform(k_wr, (Cout, Cin), minval=-bound, maxval=bound)
              + 1j * jax.random.uniform(k_wi, (Cout, Cin), minval=-bound, maxval=bound)
              ).astype(jnp.complex64)
    bias = (jax.random.uniform(k_br, (Cout,), minval=-bound, maxval=bound)
            + 1j * jax.random.uniform(k_bi, (Cout,), minval=-bound, maxval=bound)
            ).astype(jnp.complex64)

    y = out_conv_pallas(x, weight, bias)
    y = jax.block_until_ready(y)

    # Pure-JAX reference (complex 1x1 conv == channel einsum + bias).
    y_ref = jnp.einsum("nchw,oc->nohw", x, weight) + bias[None, :, None, None]
    assert y.shape == (N, Cout, H, W)
    assert y.dtype == jnp.complex64
    assert jnp.allclose(y, y_ref, atol=1e-4, rtol=1e-4)

    print("KERNEL_OK")
</pallas_src>

<mosaic_0001>
module attributes {stable_mosaic.version = 11 : i64} {
  func.func @_outconv_kernel(%arg0: i32, %arg1: i32, %arg2: memref<1x8x256xf32, #tpu.memory_space<vmem>>, %arg3: memref<6x8xf32, #tpu.memory_space<vmem>>, %arg4: memref<6x1xf32, #tpu.memory_space<vmem>>, %arg5: memref<1x6x256xf32, #tpu.memory_space<vmem>>) attributes {dimension_semantics = [#tpu.dimension_semantics<parallel>, #tpu.dimension_semantics<parallel>], iteration_bounds = array<i64: 2, 1>, scalar_prefetch = 0 : i64, scratch_operands = 0 : i64, tpu.core_type = #tpu.core_type<tc>, window_params = [{transform_indices = @transform_0, window_bounds = array<i64: 1, 8, 256>}, {pipeline_mode = #tpu.pipeline_mode<synchronous>, transform_indices = @transform_1, window_bounds = array<i64: 6, 8>}, {pipeline_mode = #tpu.pipeline_mode<synchronous>, transform_indices = @transform_2, window_bounds = array<i64: 6, 1>}, {transform_indices = @transform_3, window_bounds = array<i64: 1, 6, 256>}]} {
    %c0 = arith.constant 0 : index
    %c0_0 = arith.constant 0 : index
    %0 = vector.load %arg3[%c0, %c0_0] : memref<6x8xf32, #tpu.memory_space<vmem>>, vector<6x8xf32>
    %c0_1 = arith.constant 0 : index
    %c0_2 = arith.constant 0 : index
    %c0_3 = arith.constant 0 : index
    %1 = vector.load %arg2[%c0_1, %c0_2, %c0_3] : memref<1x8x256xf32, #tpu.memory_space<vmem>>, vector<1x8x256xf32>
    %2 = vector.shape_cast %1 : vector<1x8x256xf32> to vector<8x256xf32>
    %cst = arith.constant dense<0.000000e+00> : vector<6x256xf32>
    %3 = tpu.matmul %0, %2, %cst {dimension_numbers = #tpu.dot_dimension_numbers<[1], [0], [0], [1], [0, 0, 1, 1], [], []>} : vector<6x8xf32>, vector<8x256xf32>, vector<6x256xf32> -> vector<6x256xf32>
    %c0_4 = arith.constant 0 : index
    %c0_5 = arith.constant 0 : index
    %4 = vector.load %arg4[%c0_4, %c0_5] : memref<6x1xf32, #tpu.memory_space<vmem>>, vector<6x1xf32>
    %5 = vector.broadcast %4 : vector<6x1xf32> to vector<6x256xf32>
    %6 = arith.addf %3, %5 : vector<6x256xf32>
    %c0_6 = arith.constant 0 : index
    %c0_7 = arith.constant 0 : index
    %c0_8 = arith.constant 0 : index
    %7 = vector.load %arg5[%c0_6, %c0_7, %c0_8] : memref<1x6x256xf32, #tpu.memory_space<vmem>>, vector<1x6x256xf32>
    %8 = vector.shape_cast %7 : vector<1x6x256xf32> to vector<6x256xf32>
    %9 = vector.shape_cast %6 : vector<6x256xf32> to vector<1x6x256xf32>
    tpu.vector_store %arg5[%c0_6, %c0_7, %c0_8], %9 {strides = array<i32>} : memref<1x6x256xf32, #tpu.memory_space<vmem>>, vector<1x6x256xf32>,
    return
  }
  func.func @transform_0(%arg0: i32, %arg1: i32) -> (i32, i32, i32) {
    %c0_i32 = arith.constant 0 : i32
    %c0_i32_0 = arith.constant 0 : i32
    return %arg0, %c0_i32, %arg1 : i32, i32, i32
  }
  func.func @transform_1(%arg0: i32, %arg1: i32) -> (i32, i32) {
    %c0_i32 = arith.constant 0 : i32
    %c0_i32_0 = arith.constant 0 : i32
    %c0_i32_1 = arith.constant 0 : i32
    return %c0_i32, %c0_i32_0 : i32, i32
  }
  func.func @transform_2(%arg0: i32, %arg1: i32) -> (i32, i32) {
    %c0_i32 = arith.constant 0 : i32
    %c0_i32_0 = arith.constant 0 : i32
    %c0_i32_1 = arith.constant 0 : i32
    return %c0_i32, %c0_i32_0 : i32, i32
  }
  func.func @transform_3(%arg0: i32, %arg1: i32) -> (i32, i32, i32) {
    %c0_i32 = arith.constant 0 : i32
    %c0_i32_0 = arith.constant 0 : i32
    return %arg0, %c0_i32, %arg1 : i32, i32, i32
  }
}

</mosaic_0001>

<bundles_post_ra>
// kernel: custom-call.4
= control target key start
LH: loop header
LB: loop body
LE: loop exit
PB: predicated region body
PF: predicated region fallthrough
CT: control target
= control target key end

     0   :  { %2 = vsyncpa [#allocation0], 0  ;;  %s61_s0 = inlined_call_operand.hbm [shape: c64[3], index: 0, kind: input, shape index: {}]   ;;  %s62_s1 = inlined_call_operand.vmem [shape: f32[3], index: 1, kind: output, shape index: {}]  }
   0x1   :  { %s3_s8 = sshll.u32 %s62_s1, 4  ;;  %s9_s11 = scalar_lea.hbm %s61_s0, 16  ;;  %s4_s8 = int_to_ptr.vmem [resolvable:$true] %s3_s8 }
   0x2   :  { %p10_p0 = scmp.ne.s32.totalorder %s61_s0, %s9_s11  ;;  %s11_s16 = scalar_lea.hbm %s61_s0, 32 }
   0x3   :  { %p12_p1 = scmp.lt.u32.totalorder %s11_s16, %s9_s11  ;;  %p13_p2 = scmp.lt.u32.totalorder %s9_s11, %s61_s0 }
   0x5   :  { %p14_p3 = por %p13_p2, %p12_p1 }
   0x7   :  { %p15_p4 = pnand %p14_p3, %p10_p0 }
   0x9   :  { %18 = shalt.err (!%p15_p4)  }
   0xa   :  { %s19_s1 = scalar_lea.vmem %s4_s8, 16  ;;  %p24_p6 = scmp.lt.s32.totalorder %s4_s8, %s4_s8 }
   0xb   :  { %p20_p5 = scmp.ne.s32.totalorder %s4_s8, %s19_s1  ;;  %p25_p7 = scmp.lt.s32.totalorder %s19_s1, %s19_s1 }
   0xd   :  { %p26_p8 = por %p25_p7, %p24_p6 }
   0xf   :  { %p27_p9 = pnand %p26_p8, %p20_p5 }
  0x11   :  { %30 = shalt.err (!%p27_p9)  }
  0x12   :  { %6 = dma.hbm_to_vmem [thread:$0]  %s61_s0, 16, %s4_s8, [#allocation0] }
  0x13   :  { %31 = dma.done.wait [#allocation0], 16  }
  0x14   :  { %32 = vsyncadd [#allocation0], 4294967280 }
  0x15   :  { %8 = vsyncpa [#allocation0], 1 }

// kernel: custom-call.3
= control target key start
LH: loop header
LB: loop body
LE: loop exit
PB: predicated region body
PF: predicated region fallthrough
CT: control target
= control target key end

     0   :  { %s59_s0 = inlined_call_operand.hbm [shape: c64[3,4], index: 0, kind: input, shape index: {}]   ;;  %s60_s1 = inlined_call_operand.vmem [shape: f32[3,4], index: 1, kind: output, shape index: {}]  }
   0x1   :  { %s2_s8 = scalar_lea.hbm %s59_s0, 64 }
   0x2   :  { %3 = vsyncpa [#allocation0], 0  ;;  %s4_s11 = sshll.u32 %s60_s1, 4  ;;  %s34_s14 = scalar_lea.hbm %s59_s0, 128  ;;  %s5_s11 = int_to_ptr.vmem [resolvable:$true] %s4_s11 }
   0x3   :  { %p11_p0 = scmp.ne.s32.totalorder %s2_s8, %s34_s14  ;;  %p13_p1 = scmp.lt.u32.totalorder %s2_s8, %s59_s0 }
   0x4   :  { %p14_p2 = scmp.lt.u32.totalorder %s34_s14, %s34_s14  ;;  %p16_p4 = scmp.lt.u32.totalorder %s34_s14, %s2_s8 }
   0x6   :  { %p15_p3 = por %p14_p2, %p13_p1 }
   0x8   :  { %p17_p5 = por %p16_p4, %p15_p3 }
   0xa   :  { %p18_p6 = pnand %p17_p5, %p11_p0 }
   0xc   :  { %21 = shalt.err (!%p18_p6)  }
   0xd   :  { %s22_s17 = scalar_lea.vmem %s5_s11, 64  ;;  %p27_p8 = scmp.lt.s32.totalorder %s5_s11, %s5_s11 }
   0xe   :  { %p23_p7 = scmp.ne.s32.totalorder %s5_s11, %s22_s17  ;;  %p28_p9 = scmp.lt.s32.totalorder %s22_s17, %s22_s17 }
  0x10   :  { %p29_p10 = por %p28_p9, %p27_p8 }
  0x12   :  { %p30_p11 = pnand %p29_p10, %p23_p7 }
  0x14   :  { %33 = shalt.err (!%p30_p11)  }
  0x15   :  { %7 = dma.hbm_to_vmem [thread:$0]  %s2_s8, 64, %s5_s11, [#allocation0] }
  0x16   :  { %35 = dma.done.wait [#allocation0], 64  }
  0x17   :  { %36 = vsyncadd [#allocation0], 4294967232 }
  0x18   :  { %9 = vsyncpa [#allocation0], 1 }

// kernel: custom-call.5
= control target key start
LH: loop header
LB: loop body
LE: loop exit
PB: predicated region body
PF: predicated region fallthrough
CT: control target
= control target key end

     0   :  { %s59_s0 = inlined_call_operand.hbm [shape: c64[3], index: 0, kind: input, shape index: {}]   ;;  %s60_s1 = inlined_call_operand.vmem [shape: f32[3], index: 1, kind: output, shape index: {}]  }
   0x1   :  { %s2_s8 = scalar_lea.hbm %s59_s0, 16 }
   0x2   :  { %3 = vsyncpa [#allocation0], 0  ;;  %s4_s11 = sshll.u32 %s60_s1, 4  ;;  %s34_s14 = scalar_lea.hbm %s59_s0, 32  ;;  %s5_s11 = int_to_ptr.vmem [resolvable:$true] %s4_s11 }
   0x3   :  { %p11_p0 = scmp.ne.s32.totalorder %s2_s8, %s34_s14  ;;  %p13_p1 = scmp.lt.u32.totalorder %s2_s8, %s59_s0 }
   0x4   :  { %p14_p2 = scmp.lt.u32.totalorder %s34_s14, %s34_s14  ;;  %p16_p4 = scmp.lt.u32.totalorder %s34_s14, %s2_s8 }
   0x6   :  { %p15_p3 = por %p14_p2, %p13_p1 }
   0x8   :  { %p17_p5 = por %p16_p4, %p15_p3 }
   0xa   :  { %p18_p6 = pnand %p17_p5, %p11_p0 }
   0xc   :  { %21 = shalt.err (!%p18_p6)  }
   0xd   :  { %s22_s17 = scalar_lea.vmem %s5_s11, 16  ;;  %p27_p8 = scmp.lt.s32.totalorder %s5_s11, %s5_s11 }
   0xe   :  { %p23_p7 = scmp.ne.s32.totalorder %s5_s11, %s22_s17  ;;  %p28_p9 = scmp.lt.s32.totalorder %s22_s17, %s22_s17 }
  0x10   :  { %p29_p10 = por %p28_p9, %p27_p8 }
  0x12   :  { %p30_p11 = pnand %p29_p10, %p23_p7 }
  0x14   :  { %33 = shalt.err (!%p30_p11)  }
  0x15   :  { %7 = dma.hbm_to_vmem [thread:$0]  %s2_s8, 16, %s5_s11, [#allocation0] }
  0x16   :  { %35 = dma.done.wait [#allocation0], 16  }
  0x17   :  { %36 = vsyncadd [#allocation0], 4294967280 }
  0x18   :  { %9 = vsyncpa [#allocation0], 1 }

// kernel: custom-call.2
= control target key start
LH: loop header
LB: loop body
LE: loop exit
PB: predicated region body
PF: predicated region fallthrough
CT: control target
= control target key end

     0   :  { %2 = vsyncpa [#allocation0], 0  ;;  %s61_s0 = inlined_call_operand.hbm [shape: c64[3,4], index: 0, kind: input, shape index: {}]   ;;  %s62_s1 = inlined_call_operand.vmem [shape: f32[3,4], index: 1, kind: output, shape index: {}]  }
   0x1   :  { %s3_s8 = sshll.u32 %s62_s1, 4  ;;  %s9_s11 = scalar_lea.hbm %s61_s0, 64  ;;  %s4_s8 = int_to_ptr.vmem [resolvable:$true] %s3_s8 }
   0x2   :  { %p10_p0 = scmp.ne.s32.totalorder %s61_s0, %s9_s11  ;;  %s11_s16 = scalar_lea.hbm %s61_s0, 128 }
   0x3   :  { %p12_p1 = scmp.lt.u32.totalorder %s11_s16, %s9_s11  ;;  %p13_p2 = scmp.lt.u32.totalorder %s9_s11, %s61_s0 }
   0x5   :  { %p14_p3 = por %p13_p2, %p12_p1 }
   0x7   :  { %p15_p4 = pnand %p14_p3, %p10_p0 }
   0x9   :  { %18 = shalt.err (!%p15_p4)  }
   0xa   :  { %s19_s1 = scalar_lea.vmem %s4_s8, 64  ;;  %p24_p6 = scmp.lt.s32.totalorder %s4_s8, %s4_s8 }
   0xb   :  { %p20_p5 = scmp.ne.s32.totalorder %s4_s8, %s19_s1  ;;  %p25_p7 = scmp.lt.s32.totalorder %s19_s1, %s19_s1 }
   0xd   :  { %p26_p8 = por %p25_p7, %p24_p6 }
   0xf   :  { %p27_p9 = pnand %p26_p8, %p20_p5 }
  0x11   :  { %30 = shalt.err (!%p27_p9)  }
  0x12   :  { %6 = dma.hbm_to_vmem [thread:$0]  %s61_s0, 64, %s4_s8, [#allocation0] }
  0x13   :  { %31 = dma.done.wait [#allocation0], 64  }
  0x14   :  { %32 = vsyncadd [#allocation0], 4294967232 }
  0x15   :  { %8 = vsyncpa [#allocation0], 1 }

// kernel: neg.1
= control target key start
LH: loop header
LB: loop body
LE: loop exit
PB: predicated region body
PF: predicated region fallthrough
CT: control target
= control target key end

     0   :  { %s24_s0 = inlined_call_operand.vmem [shape: f32[3,4], index: 0, kind: input, shape index: {}]   ;;  %s25_s1 = inlined_call_operand.vmem [shape: f32[3,4], index: 1, kind: output, shape index: {}]  }
   0x1   :  { %v2_v0 = vld [vmem:[%s24_s0] sm:$0x7] }
   0x2   :  { %v5_v1 = vxor.u32 2147483648, %v2_v0 }
   0x4   :  { %7 = vst [vmem:[%s25_s1] sm:$0xf] %v5_v1 }

// kernel: custom-call.1
= control target key start
LH: loop header
LB: loop body
LE: loop exit
PB: predicated region body
PF: predicated region fallthrough
CT: control target
= control target key end

     0   :  { %s59_s0 = inlined_call_operand.hbm [shape: c64[2,4,16,16], index: 0, kind: input, shape index: {}]   ;;  %s60_s1 = inlined_call_operand.vmem [shape: f32[2,4,16,16], index: 1, kind: output, shape index: {}]  }
   0x1   :  { %s2_s8 = scalar_lea.hbm %s59_s0, 2048 }
   0x2   :  { %3 = vsyncpa [#allocation0], 0  ;;  %s4_s11 = sshll.u32 %s60_s1, 4  ;;  %s34_s14 = scalar_lea.hbm %s59_s0, 4096  ;;  %s5_s11 = int_to_ptr.vmem [resolvable:$true] %s4_s11 }
   0x3   :  { %p11_p0 = scmp.ne.s32.totalorder %s2_s8, %s34_s14  ;;  %p13_p1 = scmp.lt.u32.totalorder %s2_s8, %s59_s0 }
   0x4   :  { %p14_p2 = scmp.lt.u32.totalorder %s34_s14, %s34_s14  ;;  %p16_p4 = scmp.lt.u32.totalorder %s34_s14, %s2_s8 }
   0x6   :  { %p15_p3 = por %p14_p2, %p13_p1 }
   0x8   :  { %p17_p5 = por %p16_p4, %p15_p3 }
   0xa   :  { %p18_p6 = pnand %p17_p5, %p11_p0 }
   0xc   :  { %21 = shalt.err (!%p18_p6)  }
   0xd   :  { %s22_s17 = scalar_lea.vmem %s5_s11, 2048  ;;  %p27_p8 = scmp.lt.s32.totalorder %s5_s11, %s5_s11 }
   0xe   :  { %p23_p7 = scmp.ne.s32.totalorder %s5_s11, %s22_s17  ;;  %p28_p9 = scmp.lt.s32.totalorder %s22_s17, %s22_s17 }
  0x10   :  { %p29_p10 = por %p28_p9, %p27_p8 }
  0x12   :  { %p30_p11 = pnand %p29_p10, %p23_p7 }
  0x14   :  { %33 = shalt.err (!%p30_p11)  }
  0x15   :  { %7 = dma.hbm_to_vmem [thread:$0]  %s2_s8, 2048, %s5_s11, [#allocation0] }
  0x16   :  { %35 = dma.done.wait [#allocation0], 2048  }
  0x17   :  { %36 = vsyncadd [#allocation0], 4294965248 }
  0x18   :  { %9 = vsyncpa [#allocation0], 1 }

// kernel: custom-call
= control target key start
LH: loop header
LB: loop body
LE: loop exit
PB: predicated region body
PF: predicated region fallthrough
CT: control target
= control target key end

     0   :  { %2 = vsyncpa [#allocation0], 0  ;;  %s61_s0 = inlined_call_operand.hbm [shape: c64[2,4,16,16], index: 0, kind: input, shape index: {}]   ;;  %s62_s1 = inlined_call_operand.vmem [shape: f32[2,4,16,16], index: 1, kind: output, shape index: {}]  }
   0x1   :  { %s3_s8 = sshll.u32 %s62_s1, 4  ;;  %s9_s11 = scalar_lea.hbm %s61_s0, 2048  ;;  %s4_s8 = int_to_ptr.vmem [resolvable:$true] %s3_s8 }
   0x2   :  { %p10_p0 = scmp.ne.s32.totalorder %s61_s0, %s9_s11  ;;  %s11_s16 = scalar_lea.hbm %s61_s0, 4096 }
   0x3   :  { %p12_p1 = scmp.lt.u32.totalorder %s11_s16, %s9_s11  ;;  %p13_p2 = scmp.lt.u32.totalorder %s9_s11, %s61_s0 }
   0x5   :  { %p14_p3 = por %p13_p2, %p12_p1 }
   0x7   :  { %p15_p4 = pnand %p14_p3, %p10_p0 }
   0x9   :  { %18 = shalt.err (!%p15_p4)  }
   0xa   :  { %s19_s1 = scalar_lea.vmem %s4_s8, 2048  ;;  %p24_p6 = scmp.lt.s32.totalorder %s4_s8, %s4_s8 }
   0xb   :  { %p20_p5 = scmp.ne.s32.totalorder %s4_s8, %s19_s1  ;;  %p25_p7 = scmp.lt.s32.totalorder %s19_s1, %s19_s1 }
   0xd   :  { %p26_p8 = por %p25_p7, %p24_p6 }
   0xf   :  { %p27_p9 = pnand %p26_p8, %p20_p5 }
  0x11   :  { %30 = shalt.err (!%p27_p9)  }
  0x12   :  { %6 = dma.hbm_to_vmem [thread:$0]  %s61_s0, 2048, %s4_s8, [#allocation0] }
  0x13   :  { %31 = dma.done.wait [#allocation0], 2048  }
  0x14   :  { %32 = vsyncadd [#allocation0], 4294965248 }
  0x15   :  { %8 = vsyncpa [#allocation0], 1 }

// kernel: custom-call.6
= control target key start
LH: loop header
LB: loop body
LE: loop exit
PB: predicated region body
PF: predicated region fallthrough
CT: control target
= control target key end

     0   :  { %s312_s0 = inlined_call_operand.vmem [shape: f32[2,3,16,16], index: 0, kind: input, shape index: {}]   ;;  %s313_s2 = inlined_call_operand.vmem [shape: c64[2,3,16,16], index: 2, kind: output, shape index: {}]   ;;  %s314_s1 = inlined_call_operand.vmem [shape: f32[2,3,16,16], index: 1, kind: input, shape index: {}]  }
   0x1   :  { %v5_v0 = vld [vmem:[%s312_s0] sm:$0xff]  ;;  %v108_v1 = vld [vmem:[%s312_s0 + $0x8] sm:$0xff]  ;;  %v110_v2 = vld [vmem:[%s312_s0 + $0x10] sm:$0xff] }
   0x2   :  { %6 = vst [vmem:[%s313_s2] sm:$0xff] %v5_v0  ;;  %109 = vst [vmem:[%s313_s2 + $0x8] sm:$0xff] %v108_v1  ;;  %v112_v3 = vld [vmem:[%s312_s0 + $0x18] sm:$0xff]  ;;  %v114_v4 = vld [vmem:[%s312_s0 + $0x20] sm:$0xff] }
   0x3   :  { %111 = vst [vmem:[%s313_s2 + $0x10] sm:$0xff] %v110_v2  ;;  %v116_v5 = vld [vmem:[%s312_s0 + $0x28] sm:$0xff]  ;;  %113 = vst [vmem:[%s313_s2 + $0x18] sm:$0xff] %v112_v3  ;;  %v118_v6 = vld [vmem:[%s312_s0 + $0x30] sm:$0xff] }
   0x4   :  { %115 = vst [vmem:[%s313_s2 + $0x20] sm:$0xff] %v114_v4  ;;  %117 = vst [vmem:[%s313_s2 + $0x28] sm:$0xff] %v116_v5  ;;  %v120_v7 = vld [vmem:[%s312_s0 + $0x38] sm:$0xff]  ;;  %v122_v8 = vld [vmem:[%s312_s0 + $0x40] sm:$0xff] }
   0x5   :  { %119 = vst [vmem:[%s313_s2 + $0x30] sm:$0xff] %v118_v6  ;;  %121 = vst [vmem:[%s313_s2 + $0x38] sm:$0xff] %v120_v7  ;;  %v124_v9 = vld [vmem:[%s312_s0 + $0x48] sm:$0xff]  ;;  %v126_v10 = vld [vmem:[%s312_s0 + $0x50] sm:$0xff] }
   0x6   :  { %123 = vst [vmem:[%s313_s2 + $0x40] sm:$0xff] %v122_v8  ;;  %v128_v11 = vld [vmem:[%s312_s0 + $0x58] sm:$0xff]  ;;  %125 = vst [vmem:[%s313_s2 + $0x48] sm:$0xff] %v124_v9  ;;  %v51_v12 = vld [vmem:[%s314_s1] sm:$0xff] }
   0x7   :  { %127 = vst [vmem:[%s313_s2 + $0x50] sm:$0xff] %v126_v10  ;;  %129 = vst [vmem:[%s313_s2 + $0x58] sm:$0xff] %v128_v11  ;;  %v131_v13 = vld [vmem:[%s314_s1 + $0x8] sm:$0xff]  ;;  %v133_v14 = vld [vmem:[%s314_s1 + $0x10] sm:$0xff] }
   0x8   :  { %130 = vst [vmem:[%s313_s2 + $0x60] sm:$0xff] %v51_v12  ;;  %132 = vst [vmem:[%s313_s2 + $0x68] sm:$0xff] %v131_v13  ;;  %v135_v15 = vld [vmem:[%s314_s1 + $0x18] sm:$0xff]  ;;  %v137_v16 = vld [vmem:[%s314_s1 + $0x20] sm:$0xff] }
   0x9   :  { %134 = vst [vmem:[%s313_s2 + $0x70] sm:$0xff] %v133_v14  ;;  %v139_v17 = vld [vmem:[%s314_s1 + $0x28] sm:$0xff]  ;;  %136 = vst [vmem:[%s313_s2 + $0x78] sm:$0xff] %v135_v15  ;;  %v141_v18 = vld [vmem:[%s314_s1 + $0x30] sm:$0xff] }
   0xa   :  { %138 = vst [vmem:[%s313_s2 + $0x80] sm:$0xff] %v137_v16  ;;  %140 = vst [vmem:[%s313_s2 + $0x88] sm:$0xff] %v139_v17  ;;  %v143_v19 = vld [vmem:[%s314_s1 + $0x38] sm:$0xff]  ;;  %v145_v20 = vld [vmem:[%s314_s1 + $0x40] sm:$0xff] }
   0xb   :  { %142 = vst [vmem:[%s313_s2 + $0x90] sm:$0xff] %v141_v18  ;;  %144 = vst [vmem:[%s313_s2 + $0x98] sm:$0xff] %v143_v19  ;;  %v147_v21 = vld [vmem:[%s314_s1 + $0x48] sm:$0xff]  ;;  %v149_v22 = vld [vmem:[%s314_s1 + $0x50] sm:$0xff] }
   0xc   :  { %146 = vst [vmem:[%s313_s2 + $0xa0] sm:$0xff] %v145_v20  ;;  %v151_v23 = vld [vmem:[%s314_s1 + $0x58] sm:$0xff]  ;;  %148 = vst [vmem:[%s313_s2 + $0xa8] sm:$0xff] %v147_v21 }
   0xd   :  { %150 = vst [vmem:[%s313_s2 + $0xb0] sm:$0xff] %v149_v22  ;;  %152 = vst [vmem:[%s313_s2 + $0xb8] sm:$0xff] %v151_v23 }

// kernel: out_conv_pallas.1
= control target key start
LH: loop header
LB: loop body
LE: loop exit
PB: predicated region body
PF: predicated region fallthrough
CT: control target
= control target key end

     0   :  { %s470_s12 = smov 0   ;;  %s472_s13 = smov 0   ;;  %s509_s0 = inlined_call_operand.vmem [shape: f32[2,8,256], index: 0, kind: input, shape index: {}]   ;;  %s510_s1 = inlined_call_operand.vmem [shape: f32[6,8], index: 1, kind: input, shape index: {}]   ;;  %s511_s2 = inlined_call_operand.vmem [shape: f32[6,1], index: 2, kind: input, shape index: {}]   ;;  %s512_s3 = inlined_call_operand.vmem [shape: f32[2,6,256], index: 3, kind: output, shape index: {}]  }
   0x1   :  { %s474_s14 = smov 0  }
   0x2 LB: > { %s25_s15 = sadd.s32 1, %s442_s13  ;;  %p387_p0 = scmp.ge.s32.totalorder %s446_s14, 1  ;;  %s446_s14 = sphi %s474_s14, %s13_s14   ;;  %s442_s13 = sphi %s472_s13, %s514_s13   ;;  %s438_s12 = sphi %s470_s12, %s513_s12  }
   0x3   : > { %p27_p1 = scmp.ge.s32.totalorder %s25_s15, 2  ;;  %p158_p2 = scmp.lt.s32.totalorder %s446_s14, 3 }
   0x5   : > { %s516_s15 = smov (%p27_p1, %s25_s15), 0  ;;  %p159_p3 = pnand %p387_p0, %p158_p2 }
   0x6   : > { %p191_p4 = scmp.lt.s32.totalorder (!%p159_p3), %s438_s12, 1  ;;  %v448_v0 = vmov (!%p159_p3), 0.0   ;;  %v449_v1 = vmov (!%p159_p3), 0   ;;  %v213_v2 = vld [vmem:[%s511_s2] sm:$0x3f] (!%p159_p3)  ;;  %vm219_vm0 = vcmask (!%p159_p3), 64512  }
   0x7   : > { %162 = sbr.rel (%p159_p3) target bundleno = 236 (0xec), region = 32  ;;  %287 = vmatprep.mubr.f32.mxu0 (!%p159_p3), %v448_v0  ;;  %423 = vset.pattern.permute.xlu0 (!%p159_p3), %v449_v1  ;;  %v210_v5 = vld [vmem:[%s510_s1] sm:$0x3f] (!%p159_p3) }
   0x8   : > { %216 = vperm.xlu0 (!%p159_p3), %423, %v213_v2  }
   0xe   : > { %s518_s12 = smov (!%p191_p4, %s438_s12), 1 }
   0xf   : > { %s395_s18 = sshll.u32 %s518_s12, 4 }
  0x10   : > { %s198_s21 = scalar_lea.vmem %s509_s0, %s395_s18  ;;  %s208_s26 = scalar_lea.vmem %s512_s3, %s395_s18 }
  0x11   : > { %v212_v3 = vld [vmem:[%s198_s21 + $0x8] sm:$0xff]  ;;  %v211_v4 = vld [vmem:[%s198_s21] sm:$0xff] }
  0x12   : > { %223 = vmatprep.subr.mxu0 %v212_v3 }
  0x13   : > { %224 = vmatpush1.msra.mxu0 %v211_v4 }
  0x14   : > { %392 = vmatmul.mubr.msk.f32.vlgmr.msra.gmra.mrb[0].mxu0 %vm219_vm0, %v210_v5 }
  0x87   : > { %v217_v6 = vpop.permute.xlu0 %216 }
  0xe7   : > { %v289_v7 = vpop.f32.mrb[0].mxu0 }
  0xe8   : > { %v290_v8 = vadd.f32 %v289_v7, %v217_v6  ;;  %v291_v9 = vpop.f32.mrb[1].mxu0 }
  0xe9   : > { %v292_v10 = vadd.f32 %v291_v9, %v217_v6 }
  0xea   : > { %294 = vst [vmem:[%s208_s26] sm:$0x3f] %v290_v8 }
  0xeb   : > { %295 = vst [vmem:[%s208_s26 + $0x8] sm:$0x3f] %v292_v10 }
  0xec PF: > { %s13_s14 = sadd.s32 1, %s446_s14   ;;  %s513_s12 = smov %s442_s13 }
  0xed   : > { %p10_p5 = scmp.ge.s32.totalorder %s13_s14, 4   ;;  %s514_s13 = smov %s516_s15 }
  0xef   :  { %12 = sbr.rel (!%p10_p5) target bundleno = 2 (0x2), region = 62 }

</bundles_post_ra>
